<compile_context>
chip_gen: v5e
topology: v5e:2x2
jax: 0.10.0
libtpu: 0.0.40
codegen_flags: <defaults>
</compile_context>

<pallas_src>
import functools

import jax
import jax.numpy as jnp
from jax import lax
from jax.experimental import pallas as pl
from jax.experimental.pallas import tpu as pltpu


def _repvggdw_kernel(x_ref, p_ref, m_ref, o_ref, *, W):
    """One row-tile of depthwise channels.

    x_ref : (TR, HWp) input tile, rows = (n, c) channels, lanes = flat H*W (padded)
    p_ref : (TR, 10)  folded per-channel params: 9 conv taps (row-major 3x3) + bias
    m_ref : (4, HWp)  {0,1} float boundary masks: not-left-col, not-right-col,
                      not-top-row, not-bottom-row (pad lanes are 0)
    o_ref : (TR, HWp)
    """
    x = x_ref[...].astype(jnp.float32)
    p = p_ref[...].astype(jnp.float32)
    lanes = x.shape[-1]                      # padded H*W (multiple of 128)

    m_notleft = m_ref[0:1, :]                # col >= 1
    m_notright = m_ref[1:2, :]               # col <= W - 2
    m_nottop = m_ref[2:3, :]                 # row >= 1
    m_notbot = m_ref[3:4, :]                 # row <= H - 2

    # pltpu.roll follows jnp.roll: roll(x, s)[q] == x[(q - s) % lanes].
    xl = pltpu.roll(x, 1, axis=1) * m_notleft            # xl[q] = x[q - 1]
    xr = pltpu.roll(x, lanes - 1, axis=1) * m_notright   # xr[q] = x[q + 1]

    def w(t):                                # (TR, 1) lane-broadcast weight
        return p[:, t:t + 1]

    # Horizontal combos for the three kernel rows (kh = 0, 1, 2).
    c_top = xl * w(0) + x * w(1) + xr * w(2)
    c_mid = xl * w(3) + x * w(4) + xr * w(5)
    c_bot = xl * w(6) + x * w(7) + xr * w(8)

    # Vertical shifts of the top / bottom combos (+ row masks), then sum.
    up = pltpu.roll(c_top, W, axis=1) * m_nottop               # += c_top[p - W]
    down = pltpu.roll(c_bot, lanes - W, axis=1) * m_notbot     # += c_bot[p + W]

    o_ref[...] = (c_mid + up + down + p[:, 9:10]).astype(o_ref.dtype)


def _round_up(a, m):
    return (a + m - 1) // m * m


def _chip_budgets():
    """(per-tile VMEM budget, vmem_limit_bytes), tuned per TPU generation."""
    try:
        cap = int(pltpu.get_tpu_info().vmem_capacity_bytes)
    except Exception:
        cap = None
    if cap is not None and cap > 80 * 1024 * 1024:
        # v5e / v6e: 128 MiB physical VMEM -> larger streaming blocks.
        return 4 * 1024 * 1024, 64 * 1024 * 1024
    # v7x (64 MiB per TensorCore) or unknown: stay conservative.
    return 2 * 1024 * 1024, 40 * 1024 * 1024


def _pick_row_tile(num_rows, lane_elems, budget_bytes, bytes_per_elem=4):
    """Row tile: multiple of 8, always within the per-block VMEM budget, and
    (when there is enough work) leaving >= 2 grid steps so the 'parallel' axis
    can split across both v7x TensorCores.  Never falls back to a whole-array
    block that ignores the budget."""
    max_rows = max(8, (budget_bytes // (lane_elems * bytes_per_elem)) // 8 * 8)
    tr = min(_round_up(num_rows, 8), max_rows)
    if tr >= num_rows and num_rows > 8:
        tr = min(tr, _round_up(-(-num_rows // 2), 8))
    return tr


def repvggdw_forward(x_nchw, w3_oihw, bn1, w1_vec, b1_vec, bn2, eps=1e-5):
    """x_nchw: (N, C, H, W). Returns (N, C, H, W) in x's dtype (compute in f32)."""
    N, C, H, W = x_nchw.shape
    HW = H * W
    HWp = _round_up(HW, 128)         # lane-dense minor dim (avoids masked vst)
    R = N * C

    # ---- RepVGG reparameterization (host/XLA side, done once) -------------
    g1, be1, rm1, rv1 = bn1
    g2, be2, rm2, rv2 = bn2
    scale1 = g1 * lax.rsqrt(rv1 + eps)
    shift1 = be1 - rm1 * scale1
    scale2 = g2 * lax.rsqrt(rv2 + eps)
    shift2 = be2 - rm2 * scale2

    w3 = w3_oihw[:, 0, :, :].astype(jnp.float32)              # (C, 3, 3)
    wf = w3 * (scale1 * scale2)[:, None, None]                # BN1 + BN2 fold
    wf = wf.at[:, 1, 1].add(scale2 * (1.0 + w1_vec))          # 1x1 conv + id
    bf = scale2 * (shift1 + b1_vec) + shift2                  # folded bias

    # Per-row (= per (n, c) channel) parameter table: 9 taps + bias.
    params_c = jnp.concatenate([wf.reshape(C, 9), bf.reshape(C, 1)], axis=1)
    params = jnp.tile(params_c, (N, 1)).astype(jnp.float32)    # (R, 10)

    # ---- Precomputed boundary masks (constant block, replaces in-kernel iota)
    lane = jnp.arange(HWp, dtype=jnp.int32)
    col = lane % W
    row = lane // W
    valid = lane < HW
    masks = jnp.stack(
        [(col >= 1) & valid,
         (col <= W - 2) & valid,
         (row >= 1) & valid,
         (row <= H - 2) & valid],
        axis=0).astype(jnp.float32)                            # (4, HWp)

    budget_bytes, vmem_limit = _chip_budgets()
    TR = _pick_row_tile(R, HWp, budget_bytes)
    grid_len = -(-R // TR)
    Rp = grid_len * TR

    # Native NCHW order: rows = (n, c) channels, lanes = flattened H*W.
    # (NOTE: for a bf16 I/O path, keep TR a multiple of 16 for sublane packing.)
    x2 = x_nchw.reshape(R, HW)
    if HWp != HW or Rp != R:
        x2 = jnp.pad(x2, ((0, Rp - R), (0, HWp - HW)))
    if Rp != R:
        params = jnp.pad(params, ((0, Rp - R), (0, 0)))

    kernel = functools.partial(_repvggdw_kernel, W=W)

    out2 = pl.pallas_call(
        kernel,
        out_shape=jax.ShapeDtypeStruct((Rp, HWp), x_nchw.dtype),
        grid_spec=pltpu.PrefetchScalarGridSpec(
            num_scalar_prefetch=0,
            grid=(grid_len,),
            in_specs=[
                pl.BlockSpec((TR, HWp), lambda r: (r, 0)),
                pl.BlockSpec((TR, 10), lambda r: (r, 0)),
                pl.BlockSpec((4, HWp), lambda r: (0, 0)),
            ],
            out_specs=pl.BlockSpec((TR, HWp), lambda r: (r, 0)),
        ),
        compiler_params=pltpu.CompilerParams(
            dimension_semantics=("parallel",),
            vmem_limit_bytes=vmem_limit,
        ),
    )(x2, params, masks)

    return out2[:R, :HW].reshape(N, C, H, W)


def _reference(x_nchw, w3_oihw, bn1, w1_vec, b1_vec, bn2, eps=1e-5):
    """Pure-JAX reference (unfolded: lax depthwise conv + BNs) for checking."""
    N, C, H, W = x_nchw.shape
    x = jnp.transpose(x_nchw, (0, 2, 3, 1))
    w_hwio = jnp.transpose(w3_oihw[:, 0, :, :], (1, 2, 0)).reshape(3, 3, 1, C)
    dn = lax.conv_dimension_numbers(x.shape, w_hwio.shape,
                                    ("NHWC", "HWIO", "NHWC"))
    y = lax.conv_general_dilated(x, w_hwio, (1, 1), "SAME",
                                 dimension_numbers=dn,
                                 feature_group_count=C)
    g1, be1, rm1, rv1 = bn1
    g2, be2, rm2, rv2 = bn2
    y = (y - rm1) / jnp.sqrt(rv1 + eps) * g1 + be1
    y1 = x * w1_vec + b1_vec
    s = y + y1 + x
    out = (s - rm2) / jnp.sqrt(rv2 + eps) * g2 + be2
    return jnp.transpose(out, (0, 3, 1, 2))


if __name__ == "__main__":
    key = jax.random.PRNGKey(0)
    N, C, H, W = 2, 4, 16, 16  # ed = 4

    ks = jax.random.split(key, 12)
    x = jax.random.normal(ks[0], (N, C, H, W), jnp.float32)

    # Depthwise 3x3 conv weights (C, 1, 3, 3), no bias (Conv2d_BN).
    w3 = jax.random.normal(ks[1], (C, 1, 3, 3), jnp.float32) * 0.2
    # BN inside Conv2d_BN: weight init 1, bias init 0; random running stats.
    bn1 = (
        jnp.ones((C,), jnp.float32),                                   # gamma
        jnp.zeros((C,), jnp.float32),                                  # beta
        jax.random.normal(ks[2], (C,), jnp.float32) * 0.1,             # mean
        jax.random.uniform(ks[3], (C,), jnp.float32, 0.5, 1.5),        # var
    )
    # Depthwise 1x1 conv (C, 1, 1, 1) with bias.
    w1_vec = jax.random.normal(ks[4], (C,), jnp.float32) * 0.3
    b1_vec = jax.random.normal(ks[5], (C,), jnp.float32) * 0.1
    # Final BatchNorm2d.
    bn2 = (
        jax.random.uniform(ks[6], (C,), jnp.float32, 0.8, 1.2),        # gamma
        jax.random.normal(ks[7], (C,), jnp.float32) * 0.1,             # beta
        jax.random.normal(ks[8], (C,), jnp.float32) * 0.1,             # mean
        jax.random.uniform(ks[9], (C,), jnp.float32, 0.5, 1.5),        # var
    )

    out = repvggdw_forward(x, w3, bn1, w1_vec, b1_vec, bn2)
    out = jax.block_until_ready(out)

    ref = _reference(x, w3, bn1, w1_vec, b1_vec, bn2)
    assert out.shape == (N, C, H, W)
    assert jnp.allclose(out, ref, atol=2e-4, rtol=2e-4), "mismatch vs reference"

    print("KERNEL_OK")
</pallas_src>

<mosaic_0001>
module attributes {stable_mosaic.version = 11 : i64} {
  func.func @_repvggdw_kernel(%arg0: i32, %arg1: memref<8x256xf32, #tpu.memory_space<vmem>>, %arg2: memref<8x10xf32, #tpu.memory_space<vmem>>, %arg3: memref<4x256xf32, #tpu.memory_space<vmem>>, %arg4: memref<8x256xf32, #tpu.memory_space<vmem>>) attributes {dimension_semantics = [#tpu.dimension_semantics<parallel>], iteration_bounds = array<i64: 1>, scalar_prefetch = 0 : i64, scratch_operands = 0 : i64, tpu.core_type = #tpu.core_type<tc>, window_params = [{transform_indices = @transform_0, window_bounds = array<i64: 8, 256>}, {transform_indices = @transform_1, window_bounds = array<i64: 8, 10>}, {pipeline_mode = #tpu.pipeline_mode<synchronous>, transform_indices = @transform_2, window_bounds = array<i64: 4, 256>}, {transform_indices = @transform_3, window_bounds = array<i64: 8, 256>}]} {
    %c0 = arith.constant 0 : index
    %c0_0 = arith.constant 0 : index
    %0 = vector.load %arg1[%c0, %c0_0] : memref<8x256xf32, #tpu.memory_space<vmem>>, vector<8x256xf32>
    %c0_1 = arith.constant 0 : index
    %c0_2 = arith.constant 0 : index
    %1 = vector.load %arg2[%c0_1, %c0_2] : memref<8x10xf32, #tpu.memory_space<vmem>>, vector<8x10xf32>
    %c0_3 = arith.constant 0 : index
    %c0_4 = arith.constant 0 : index
    %2 = vector.load %arg3[%c0_3, %c0_4] : memref<4x256xf32, #tpu.memory_space<vmem>>, vector<1x256xf32>
    %c1 = arith.constant 1 : index
    %c0_5 = arith.constant 0 : index
    %3 = vector.load %arg3[%c1, %c0_5] : memref<4x256xf32, #tpu.memory_space<vmem>>, vector<1x256xf32>
    %c2 = arith.constant 2 : index
    %c0_6 = arith.constant 0 : index
    %4 = vector.load %arg3[%c2, %c0_6] : memref<4x256xf32, #tpu.memory_space<vmem>>, vector<1x256xf32>
    %c3 = arith.constant 3 : index
    %c0_7 = arith.constant 0 : index
    %5 = vector.load %arg3[%c3, %c0_7] : memref<4x256xf32, #tpu.memory_space<vmem>>, vector<1x256xf32>
    %c1_i32 = arith.constant 1 : i32
    %6 = tpu.dynamic_rotate %0 by %c1_i32 dim 1 : vector<8x256xf32>, i32 -> vector<8x256xf32>
    %7 = vector.broadcast %2 : vector<1x256xf32> to vector<8x256xf32>
    %8 = arith.mulf %6, %7 : vector<8x256xf32>
    %c255_i32 = arith.constant 255 : i32
    %9 = tpu.dynamic_rotate %0 by %c255_i32 dim 1 : vector<8x256xf32>, i32 -> vector<8x256xf32>
    %10 = vector.broadcast %3 : vector<1x256xf32> to vector<8x256xf32>
    %11 = arith.mulf %9, %10 : vector<8x256xf32>
    %12 = vector.extract_strided_slice %1 {offsets = [0, 0], sizes = [8, 1], strides = [1, 1]} : vector<8x10xf32> to vector<8x1xf32>
    %13 = vector.broadcast %12 : vector<8x1xf32> to vector<8x256xf32>
    %14 = arith.mulf %8, %13 : vector<8x256xf32>
    %15 = vector.extract_strided_slice %1 {offsets = [0, 1], sizes = [8, 1], strides = [1, 1]} : vector<8x10xf32> to vector<8x1xf32>
    %16 = vector.broadcast %15 : vector<8x1xf32> to vector<8x256xf32>
    %17 = arith.mulf %0, %16 : vector<8x256xf32>
    %18 = arith.addf %14, %17 : vector<8x256xf32>
    %19 = vector.extract_strided_slice %1 {offsets = [0, 2], sizes = [8, 1], strides = [1, 1]} : vector<8x10xf32> to vector<8x1xf32>
    %20 = vector.broadcast %19 : vector<8x1xf32> to vector<8x256xf32>
    %21 = arith.mulf %11, %20 : vector<8x256xf32>
    %22 = arith.addf %18, %21 : vector<8x256xf32>
    %23 = vector.extract_strided_slice %1 {offsets = [0, 3], sizes = [8, 1], strides = [1, 1]} : vector<8x10xf32> to vector<8x1xf32>
    %24 = vector.broadcast %23 : vector<8x1xf32> to vector<8x256xf32>
    %25 = arith.mulf %8, %24 : vector<8x256xf32>
    %26 = vector.extract_strided_slice %1 {offsets = [0, 4], sizes = [8, 1], strides = [1, 1]} : vector<8x10xf32> to vector<8x1xf32>
    %27 = vector.broadcast %26 : vector<8x1xf32> to vector<8x256xf32>
    %28 = arith.mulf %0, %27 : vector<8x256xf32>
    %29 = arith.addf %25, %28 : vector<8x256xf32>
    %30 = vector.extract_strided_slice %1 {offsets = [0, 5], sizes = [8, 1], strides = [1, 1]} : vector<8x10xf32> to vector<8x1xf32>
    %31 = vector.broadcast %30 : vector<8x1xf32> to vector<8x256xf32>
    %32 = arith.mulf %11, %31 : vector<8x256xf32>
    %33 = arith.addf %29, %32 : vector<8x256xf32>
    %34 = vector.extract_strided_slice %1 {offsets = [0, 6], sizes = [8, 1], strides = [1, 1]} : vector<8x10xf32> to vector<8x1xf32>
    %35 = vector.broadcast %34 : vector<8x1xf32> to vector<8x256xf32>
    %36 = arith.mulf %8, %35 : vector<8x256xf32>
    %37 = vector.extract_strided_slice %1 {offsets = [0, 7], sizes = [8, 1], strides = [1, 1]} : vector<8x10xf32> to vector<8x1xf32>
    %38 = vector.broadcast %37 : vector<8x1xf32> to vector<8x256xf32>
    %39 = arith.mulf %0, %38 : vector<8x256xf32>
    %40 = arith.addf %36, %39 : vector<8x256xf32>
    %41 = vector.extract_strided_slice %1 {offsets = [0, 8], sizes = [8, 1], strides = [1, 1]} : vector<8x10xf32> to vector<8x1xf32>
    %42 = vector.broadcast %41 : vector<8x1xf32> to vector<8x256xf32>
    %43 = arith.mulf %11, %42 : vector<8x256xf32>
    %44 = arith.addf %40, %43 : vector<8x256xf32>
    %c16_i32 = arith.constant 16 : i32
    %45 = tpu.dynamic_rotate %22 by %c16_i32 dim 1 : vector<8x256xf32>, i32 -> vector<8x256xf32>
    %46 = vector.broadcast %4 : vector<1x256xf32> to vector<8x256xf32>
    %47 = arith.mulf %45, %46 : vector<8x256xf32>
    %c240_i32 = arith.constant 240 : i32
    %48 = tpu.dynamic_rotate %44 by %c240_i32 dim 1 : vector<8x256xf32>, i32 -> vector<8x256xf32>
    %49 = vector.broadcast %5 : vector<1x256xf32> to vector<8x256xf32>
    %50 = arith.mulf %48, %49 : vector<8x256xf32>
    %51 = arith.addf %33, %47 : vector<8x256xf32>
    %52 = arith.addf %51, %50 : vector<8x256xf32>
    %53 = vector.extract_strided_slice %1 {offsets = [0, 9], sizes = [8, 1], strides = [1, 1]} : vector<8x10xf32> to vector<8x1xf32>
    %54 = vector.broadcast %53 : vector<8x1xf32> to vector<8x256xf32>
    %55 = arith.addf %52, %54 : vector<8x256xf32>
    %c0_8 = arith.constant 0 : index
    %c0_9 = arith.constant 0 : index
    %56 = vector.load %arg4[%c0_8, %c0_9] : memref<8x256xf32, #tpu.memory_space<vmem>>, vector<8x256xf32>
    tpu.vector_store %arg4[%c0_8, %c0_9], %55 {strides = array<i32>} : memref<8x256xf32, #tpu.memory_space<vmem>>, vector<8x256xf32>,
    return
  }
  func.func @transform_0(%arg0: i32) -> (i32, i32) {
    %c0_i32 = arith.constant 0 : i32
    %c0_i32_0 = arith.constant 0 : i32
    return %arg0, %c0_i32 : i32, i32
  }
  func.func @transform_1(%arg0: i32) -> (i32, i32) {
    %c0_i32 = arith.constant 0 : i32
    %c0_i32_0 = arith.constant 0 : i32
    return %arg0, %c0_i32 : i32, i32
  }
  func.func @transform_2(%arg0: i32) -> (i32, i32) {
    %c0_i32 = arith.constant 0 : i32
    %c0_i32_0 = arith.constant 0 : i32
    %c0_i32_1 = arith.constant 0 : i32
    return %c0_i32, %c0_i32_0 : i32, i32
  }
  func.func @transform_3(%arg0: i32) -> (i32, i32) {
    %c0_i32 = arith.constant 0 : i32
    %c0_i32_0 = arith.constant 0 : i32
    return %arg0, %c0_i32 : i32, i32
  }
}

</mosaic_0001>

<bundles_post_ra>
// kernel: tpu_custom_call.1
= control target key start
LH: loop header
LB: loop body
LE: loop exit
PB: predicated region body
PF: predicated region fallthrough
CT: control target
= control target key end

     0   :  { %8 = vsyncpa [#allocation3], 0  ;;  %s434_s0 = inlined_call_operand.hbm [shape: f32[8,256], index: 0, kind: input, shape index: {}]   ;;  %s435_s1 = inlined_call_operand.hbm [shape: f32[8,10], index: 1, kind: input, shape index: {}]   ;;  %s436_s2 = inlined_call_operand.hbm [shape: f32[4,256], index: 2, kind: input, shape index: {}]   ;;  %s437_s3 = inlined_call_operand.hbm [shape: f32[8,256], index: 3, kind: output, shape index: {}]  }
   0x1   :  { %9 = vsyncpa [#allocation6], 0  ;;  %s27_s14 = sshll.u32 %s435_s1, 4  ;;  %s28_s14 = int_to_ptr.hbm [resolvable:$true] %s27_s14 }
   0x2   :  { %10 = vsyncpa [#allocation4], 0  ;;  %s352_s15 = smov [#allocation5]   ;;  %s16_s19 = sshll.u32 %s434_s0, 4  ;;  %s17_s19 = int_to_ptr.hbm [resolvable:$true] %s16_s19 }
   0x3   :  { %s29_s16 = sshll.u32 %s352_s15, 4  ;;  %s353_s20 = smov [#allocation2]   ;;  %s30_s16 = int_to_ptr.vmem [resolvable:$true] %s29_s16 }
   0x4   :  { %32 = dma.hbm_to_vmem [thread:$0]  %s28_s14, 128, %s30_s16, [#allocation6]  }
   0x5   :  { %s18_s21 = sshll.u32 %s353_s20, 4  ;;  %s38_s24 = sshll.u32 %s436_s2, 4  ;;  %s19_s21 = int_to_ptr.vmem [resolvable:$true] %s18_s21  ;;  %s39_s24 = int_to_ptr.hbm [resolvable:$true] %s38_s24 }
   0x6   :  { %21 = dma.hbm_to_vmem [thread:$0]  %s17_s19, 256, %s19_s21, [#allocation3]  }
   0x7   :  { %s354_s1 = smov [#allocation7]  }
   0x8   :  { %s40_s25 = sshll.u32 %s354_s1, 4  ;;  %s41_s25 = int_to_ptr.vmem [resolvable:$true] %s40_s25 }
   0x9   :  { %43 = dma.hbm_to_vmem [thread:$0]  %s39_s24, 128, %s41_s25, [#allocation6]  }
   0xa   :  { %346 = dma.done.wait [#allocation3], 256  }
   0xb   :  { %347 = vsyncadd [#allocation3], 4294967040 }
   0xc   :  { %348 = dma.done.wait [#allocation6], 256  }
   0xd   :  { %349 = vsyncadd [#allocation6], 4294967040  ;;  %v355_v0 = vmov 0   ;;  %v356_v1 = vmov 6   ;;  %v357_v2 = vmov 2   ;;  %v399_v3 = vld [vmem:[#allocation2] sm:$0xff]  ;;  %v70_v12 = vlaneseq }
   0xe   :  { %239 = vset.pattern.permute.xlu2 %v355_v0  ;;  %242 = vset.pattern.permute.xlu1 %v356_v1  ;;  %v401_v4 = vld [vmem:[#allocation5] sm:$0xff]  ;;  %s358_s0 = smov 127   ;;  %s359_s2 = smov 1   ;;  %v406_v5 = vld [vmem:[#allocation2 + $0x8] sm:$0xff]  ;;  %v360_v6 = vmov 1   ;;  %v361_v7 = vmov 7  }
   0xf   :  { %241 = vset.pattern.permute.xlu0 %v357_v2  ;;  %82 = vrot.lane.b32.xlu1 %v399_v3, %s358_s0  ;;  %v362_v8 = vmov 8   ;;  %v363_v9 = vmov 4   ;;  %v364_v10 = vmov 3   ;;  %v365_v11 = vmov 5   ;;  %s367_s26 = smov 16   ;;  %s368_s27 = smov 112  }
  0x10   :  { %66 = vrot.lane.b32.xlu0 %v399_v3, %s359_s2  ;;  %98 = vperm.xlu2 %239, %v401_v4   ;;  %v366_v14 = vmov 9   ;;  %v418_v17 = vand.u32 127, %v70_v12  ;;  %v59_v18 = vld [vmem:[#allocation7] ss:$4 sm:$0x3]  ;;  %s369_s28 = smov [#allocation8]  }
  0x11   :  { %v76_v19 = vperm.slane %v59_v18, 0  ;;  %v77_v20 = vperm.slane %v59_v18, 1  ;;  %v61_v21 = vld [vmem:[#allocation7 + $0x1] ss:$4 sm:$0x3]  ;;  %s208_s29 = sshll.u32 %s369_s28, 4  ;;  %s209_s29 = int_to_ptr.vmem [resolvable:$true] %s208_s29 }
  0x12   :  { %vm72_vm0 = vcmp.lt.s32.totalorder %v418_v17, 1  ;;  %vm86_vm1 = vcmp.lt.s32.totalorder %v418_v17, 127  ;;  %v90_v29 = vperm.slane %v61_v21, 0  ;;  %v91_v30 = vperm.slane %v61_v21, 1  ;;  %s210_s5 = sshll.u32 %s437_s3, 4  ;;  %s211_s5 = int_to_ptr.hbm [resolvable:$true] %s210_s5 }
  0x13   :  { %v63_v12 = vld [vmem:[#allocation7 + $0x2] ss:$4 sm:$0x3]  ;;  %vm167_vm2 = vcmp.lt.s32.totalorder %v418_v17, 16  ;;  %vm181_vm3 = vcmp.lt.s32.totalorder %v418_v17, 112 }
  0x17   :  { %84 = vrot.lane.b32.xlu1 %v406_v5, %s358_s0 }
  0x18   :  { %68 = vrot.lane.b32.xlu0 %v406_v5, %s359_s2  ;;  %240 = vset.pattern.permute.xlu2 %v360_v6 }
  0x19   :  { %104 = vperm.xlu2 %240, %v401_v4  }
  0x1f   :  { %142 = vperm.xlu1 %242, %v401_v4  }
  0x20   :  { %112 = vperm.xlu0 %241, %v401_v4  }
  0x21   :  { %243 = vset.pattern.permute.xlu2 %v361_v7 }
  0x22   :  { %148 = vperm.xlu2 %243, %v401_v4  }
  0x27   :  { %244 = vset.pattern.permute.xlu1 %v362_v8 }
  0x28   :  { %246 = vset.pattern.permute.xlu0 %v363_v9  ;;  %156 = vperm.xlu1 %244, %v401_v4  }
  0x29   :  { %126 = vperm.xlu0 %246, %v401_v4  }
  0x2a   :  { %245 = vset.pattern.permute.xlu2 %v364_v10 }
  0x2b   :  { %120 = vperm.xlu2 %245, %v401_v4  }
  0x30   :  { %247 = vset.pattern.permute.xlu1 %v365_v11 }
  0x31   :  { %134 = vperm.xlu1 %247, %v401_v4   ;;  %249 = vset.pattern.permute.xlu0 %v366_v14 }
  0x39   :  { %248 = vset.pattern.permute.xlu1 %v366_v14  ;;  %v172_v14 = vperm.slane %v63_v12, 1 }
  0x6a   :  { %v99_v13 = vpop.permute.xlu2 %98 }
  0x73   :  { %v105_v26 = vpop.permute.xlu2 %104 }
  0x74   :  { %v107_v33 = vmul.f32 %v105_v26, %v399_v3  ;;  %v108_v34 = vmul.f32 %v105_v26, %v406_v5 }
  0x7c   :  { %v149_v47 = vpop.permute.xlu2 %148 }
  0x7d   :  { %v151_v48 = vmul.f32 %v149_v47, %v399_v3  ;;  %v152_v49 = vmul.f32 %v149_v47, %v406_v5 }
  0x81   :  { %v83_v15 = vpop.permute.xlu1 %82 }
  0x82   :  { %v67_v16 = vpop.permute.xlu0 %66 }
  0x85   :  { %v121_v60 = vpop.permute.xlu2 %120 }
  0x89   :  { %v85_v22 = vpop.permute.xlu1 %84 }
  0x8a   :  { %v69_v23 = vpop.permute.xlu0 %68  ;;  %v87_v31 = vsel %vm86_vm1, %v83_v15, %v85_v22  ;;  %v88_v32 = vsel %vm86_vm1, %v85_v22, %v83_v15 }
  0x8b   :  { %v73_v24 = vsel %vm72_vm0, %v67_v16, %v69_v23  ;;  %v74_v25 = vsel %vm72_vm0, %v69_v23, %v67_v16  ;;  %v94_v37 = vmul.f32 %v90_v29, %v87_v31  ;;  %v95_v38 = vmul.f32 %v91_v30, %v88_v32  ;;  %v65_v16 = vld [vmem:[#allocation7 + $0x3] ss:$4 sm:$0x3] }
  0x8c   :  { %v80_v27 = vmul.f32 %v76_v19, %v74_v25  ;;  %v81_v28 = vmul.f32 %v77_v20, %v73_v24  ;;  %v185_v19 = vperm.slane %v65_v16, 0  ;;  %v186_v20 = vperm.slane %v65_v16, 1 }
  0x8e   :  { %v101_v35 = vmul.f32 %v99_v13, %v80_v27  ;;  %v102_v36 = vmul.f32 %v99_v13, %v81_v28  ;;  %v123_v63 = vmul.f32 %v121_v60, %v80_v27  ;;  %v124_v0 = vmul.f32 %v121_v60, %v81_v28 }
  0x8f   :  { %v171_v13 = vperm.slane %v63_v12, 0 }
  0x90   :  { %v110_v41 = vadd.f32 %v108_v34, %v102_v36  ;;  %v109_v42 = vadd.f32 %v107_v33, %v101_v35 }
  0x91   :  { %v143_v39 = vpop.permute.xlu1 %142 }
  0x92   :  { %v113_v40 = vpop.permute.xlu0 %112  ;;  %v145_v50 = vmul.f32 %v143_v39, %v80_v27  ;;  %v146_v51 = vmul.f32 %v143_v39, %v81_v28 }
  0x93   :  { %v115_v43 = vmul.f32 %v113_v40, %v94_v37  ;;  %v116_v44 = vmul.f32 %v113_v40, %v95_v38 }
  0x94   :  { %v153_v53 = vadd.f32 %v151_v48, %v145_v50  ;;  %v154_v54 = vadd.f32 %v152_v49, %v146_v51 }
  0x95   :  { %v117_v45 = vadd.f32 %v115_v43, %v109_v42  ;;  %v118_v46 = vadd.f32 %v116_v44, %v110_v41 }
  0x97   :  { %165 = vrot.lane.b32.xlu1 %v118_v46, %s367_s26  ;;  %163 = vrot.lane.b32.xlu2 %v117_v45, %s367_s26 }
  0x9a   :  { %v157_v52 = vpop.permute.xlu1 %156 }
  0x9b   :  { %v159_v55 = vmul.f32 %v157_v52, %v94_v37  ;;  %v160_v56 = vmul.f32 %v157_v52, %v95_v38  ;;  %v127_v59 = vpop.permute.xlu0 %126 }
  0x9c   :  { %v129_v61 = vmul.f32 %v127_v59, %v399_v3  ;;  %v130_v62 = vmul.f32 %v127_v59, %v406_v5 }
  0x9d   :  { %v161_v57 = vadd.f32 %v159_v55, %v153_v53  ;;  %v162_v58 = vadd.f32 %v160_v56, %v154_v54 }
  0x9e   :  { %v131_v2 = vadd.f32 %v129_v61, %v123_v63  ;;  %v132_v6 = vadd.f32 %v130_v62, %v124_v0 }
  0x9f   :  { %196 = vperm.xlu1 %248, %v401_v4   ;;  %179 = vrot.lane.b32.xlu0 %v162_v58, %s368_s27 }
  0xa0   :  { %177 = vrot.lane.b32.xlu2 %v161_v57, %s368_s27 }
  0xa3   :  { %v135_v1 = vpop.permute.xlu1 %134 }
  0xa4   :  { %v137_v7 = vmul.f32 %v135_v1, %v94_v37  ;;  %v138_v8 = vmul.f32 %v135_v1, %v95_v38 }
  0xa6   :  { %v139_v9 = vadd.f32 %v137_v7, %v131_v2  ;;  %v140_v10 = vadd.f32 %v138_v8, %v132_v6 }
  0xf1   :  { %v164_v11 = vpop.permute.xlu2 %163 }
  0xfa   :  { %v178_v21 = vpop.permute.xlu2 %177 }
 0x109   :  { %v166_v4 = vpop.permute.xlu1 %165 }
 0x10a   :  { %v168_v15 = vsel %vm167_vm2, %v164_v11, %v166_v4  ;;  %v169_v3 = vsel %vm167_vm2, %v166_v4, %v164_v11 }
 0x10b   :  { %v175_v5 = vmul.f32 %v171_v13, %v169_v3  ;;  %v176_v18 = vmul.f32 %v172_v14, %v168_v15 }
 0x10d   :  { %v191_v27 = vadd.f32 %v175_v5, %v139_v9  ;;  %v192_v28 = vadd.f32 %v176_v18, %v140_v10 }
 0x111   :  { %v180_v22 = vpop.permute.xlu0 %179  ;;  %v197_v29 = vpop.permute.xlu1 %196 }
 0x112   :  { %v182_v23 = vsel %vm181_vm3, %v178_v21, %v180_v22  ;;  %v183_v24 = vsel %vm181_vm3, %v180_v22, %v178_v21 }
 0x113   :  { %v189_v25 = vmul.f32 %v185_v19, %v182_v23  ;;  %v190_v26 = vmul.f32 %v186_v20, %v183_v24 }
 0x115   :  { %v193_v30 = vadd.f32 %v191_v27, %v189_v25  ;;  %v194_v31 = vadd.f32 %v192_v28, %v190_v26 }
 0x117   :  { %v199_v17 = vadd.f32 %v197_v29, %v193_v30  ;;  %v200_v32 = vadd.f32 %v197_v29, %v194_v31 }
 0x119   :  { %201 = vst [vmem:[#allocation8] sm:$0xff] %v199_v17 }
 0x11a   :  { %202 = vst [vmem:[#allocation8 + $0x8] sm:$0xff] %v200_v32 }
 0x11b   :  { %213 = dma.vmem_to_hbm [thread:$0]  %s209_s29, 256, %s211_s5, [#allocation4]  }
 0x11c   :  { %350 = dma.done.wait [#allocation4], 256  }
 0x11d   :  { %351 = vsyncadd [#allocation4], 4294967040 }
 0x11e   :  { %218 = vsyncpa [#allocation3], 1 }
 0x11f   :  { %219 = vsyncpa [#allocation6], 1 }
 0x120   :  { %220 = vsyncpa [#allocation4], 1 }

</bundles_post_ra>
